<compile_context>
chip_gen: v6e
topology: v6e:2x2x1
jax: 0.10.0
libtpu: 0.0.40
codegen_flags: <defaults>
</compile_context>

<pallas_src>
import jax
import jax.numpy as jnp
from jax.experimental import pallas as pl
from jax.experimental.pallas import tpu as pltpu


def _make_kernel(C, Ct, H, W):
    HW = H * W

    def kernel(x_ref, w_ref, o_ref, sum_sc, max_sc):
        # x_ref : (bt, Ct, HW)  VMEM, native dtype (bf16/f32 welcome)
        # w_ref : (27,)         SMEM f32, OIHW-flat conv weights
        # o_ref : (bt, HW) or (bt, 1, HW) VMEM
        # sum_sc / max_sc : (bt, HW) f32 running channel sum / max (persist over C steps)
        f32 = jnp.float32
        c_step = pl.program_id(1)

        @pl.when(c_step == 0)
        def _init():
            sum_sc[...] = jnp.zeros_like(sum_sc)
            max_sc[...] = jnp.full_like(max_sc, -jnp.inf)

        # ---- stream this block's Ct channels in sublane-sized chunks ---------------
        # Sum accumulated in f32, max is exact in native dtype; only (bt, HW) slabs
        # stay live (no (bt, Ct, HW) f32 copy).
        CH = 8
        nfull, rem = divmod(Ct, CH)

        def chunk_stats(c0, cs):
            if isinstance(c0, int):
                blk = x_ref[:, c0:c0 + cs, :]
            else:
                blk = x_ref[:, pl.ds(c0, cs), :]
            return (jnp.sum(blk.astype(f32), axis=1),
                    jnp.max(blk, axis=1).astype(f32))

        if nfull == 0:
            csum, cmax = chunk_stats(0, rem)
        else:
            csum, cmax = chunk_stats(0, CH)
            if nfull <= 8:                      # short trip-count: static unroll
                for k in range(1, nfull):
                    bs, bm = chunk_stats(k * CH, CH)
                    csum, cmax = csum + bs, jnp.maximum(cmax, bm)
            else:                               # long trip-count: fori_loop
                def body(k, carry):
                    s_, m_ = carry
                    bs, bm = chunk_stats(pl.multiple_of(k * CH, CH), CH)
                    return s_ + bs, jnp.maximum(m_, bm)
                csum, cmax = jax.lax.fori_loop(1, nfull, body, (csum, cmax), unroll=2)
            if rem:
                bs, bm = chunk_stats(nfull * CH, rem)
                csum, cmax = csum + bs, jnp.maximum(cmax, bm)

        sum_sc[...] = sum_sc[...] + csum
        max_sc[...] = jnp.maximum(max_sc[...], cmax)

        # ---- finalize on the last channel step: separable 3x3 stencil + sigmoid ----
        @pl.when(c_step == pl.num_programs(1) - 1)
        def _finalize():
            avg = sum_sc[...] * f32(1.0 / C)     # channel mean (hoisted 1/C scale)
            mx = max_sc[...]                     # channel max

            # Boundary masks built once at (1, HW), broadcast over the batch dim.
            pos = jax.lax.broadcasted_iota(jnp.int32, (1, HW), 1)
            col = (pos & (W - 1)) if (W & (W - 1)) == 0 else pos % W
            m_up = pos >= W                      # row-1 valid (dh == -1)
            m_dn = pos < (H - 1) * W             # row+1 valid (dh == +1)
            m_lt = col >= 1                      # col-1 valid (dw == -1)
            m_rt = col < (W - 1)                 # col+1 valid (dw == +1)
            f_up, f_dn = m_up.astype(f32), m_dn.astype(f32)
            f_lt, f_rt = m_lt.astype(f32), m_rt.astype(f32)
            neg_inf = f32(-jnp.inf)

            def shift(a, delta):
                # result[p] = a[p + delta]; circular, wrap killed by the masks.
                s = (-delta) % HW
                return a if s == 0 else pltpu.roll(a, shift=s, axis=1)

            def w(ch, dh, dw):                   # conv weight scalar, OIHW-flat SMEM
                return w_ref[ch * 9 + (dh + 1) * 3 + (dw + 1)]

            # Stage 1 (row / dh taps). The dh-rolled channel-max slabs are shared
            # between the conv 'max' channel (zero border) and the max-pool (-inf).
            avg_up = shift(avg, -W) * f_up
            avg_dn = shift(avg, +W) * f_dn
            mx_up_r = shift(mx, -W)
            mx_dn_r = shift(mx, +W)
            mx_up = mx_up_r * f_up
            mx_dn = mx_dn_r * f_dn

            row_max = jnp.maximum(
                mx, jnp.maximum(jnp.where(m_up, mx_up_r, neg_inf),
                                jnp.where(m_dn, mx_dn_r, neg_inf)))

            def col_partial(dw):                 # conv channels 0 (avg) + 1 (max)
                return (w(0, -1, dw) * avg_up + w(0, 0, dw) * avg + w(0, 1, dw) * avg_dn
                        + w(1, -1, dw) * mx_up + w(1, 0, dw) * mx + w(1, 1, dw) * mx_dn)

            p_m1, p_0, p_p1 = col_partial(-1), col_partial(0), col_partial(1)

            # Stage 2 (column / dw taps): one 0/1 mask multiply per tap.
            acc = p_0 + shift(p_m1, -1) * f_lt + shift(p_p1, +1) * f_rt

            # 3x3 max-pool of the channel max (input to conv channel 2).
            pool = jnp.maximum(
                row_max, jnp.maximum(jnp.where(m_lt, shift(row_max, -1), neg_inf),
                                     jnp.where(m_rt, shift(row_max, +1), neg_inf)))

            pool_up = shift(pool, -W) * f_up
            pool_dn = shift(pool, +W) * f_dn

            def pool_partial(dw):                # conv channel 2 (pool)
                return (w(2, -1, dw) * pool_up + w(2, 0, dw) * pool
                        + w(2, 1, dw) * pool_dn)

            q_m1, q_0, q_p1 = pool_partial(-1), pool_partial(0), pool_partial(1)
            acc = acc + q_0 + shift(q_m1, -1) * f_lt + shift(q_p1, +1) * f_rt

            out = jax.nn.sigmoid(acc)            # (bt, HW), lane-dense
            o_ref[...] = out.reshape(o_ref.shape).astype(o_ref.dtype)

    return kernel


def _tpu_generation():
    """Returns (vmem_capacity_bytes, want_two_grid_steps_for_megacore)."""
    try:
        cap = int(pltpu.get_tpu_info().vmem_capacity_bytes)
    except Exception:
        cap = 64 << 20          # conservative (v7x-like) if the query is unavailable
    # v7x: 2 TensorCores/chip, 64 MiB VMEM per TC.  v5e/v6e: 1 TC, 128 MiB VMEM.
    return cap, cap <= (64 << 20)


def _pick_channel_block(C, HW, itemsize, target_bytes):
    """Largest divisor of C whose single-image (Ct, HW) slab fits target_bytes."""
    best = 1
    for d in range(1, C + 1):
        if C % d == 0 and d * HW * itemsize <= target_bytes:
            best = d
    return best


def _pick_block_batch(B, per_image_work_bytes, target_bytes, want_two_steps):
    """Largest divisor of B whose working set fits target; prefer >=2 grid steps on
    2-TC parts and bt that gives a sublane-dense output block (bt % 8 == 0 or bt == B)."""
    cands = [d for d in range(1, B + 1)
             if B % d == 0 and (d == 1 or d * per_image_work_bytes <= target_bytes)]

    def score(d):
        two_steps = (B // d) >= 2 or B == 1
        dense_out = (d % 8 == 0) or (d == B)
        return ((two_steps if want_two_steps else True), dense_out, d)

    return max(cands, key=score)


def spatial_attention(x, conv_weight, *, block_batch=None, block_channels=None):
    """x: (B, C, H, W) float (f32 or bf16); conv_weight: (1, 3, 3, 3) OIHW.
    Returns sigmoid(conv([mean_c, max_c, max_c(maxpool3x3)])) with shape (B, 1, H, W)."""
    B, C, H, W = x.shape
    HW = H * W
    x_flat = x.reshape(B, C, HW)                          # contiguous reshape: no copy
    w_flat = conv_weight.reshape(-1).astype(jnp.float32)  # (27,) OIHW order
    out_dtype = x.dtype
    in_item = x.dtype.itemsize
    out_item = jnp.dtype(out_dtype).itemsize

    vmem_cap, want_two_steps = _tpu_generation()

    # Channel-grid block: keeps each per-image DMA slab in the 2-8 MiB sweet spot.
    if block_channels is None:
        Ct = _pick_channel_block(C, HW, in_item, 4 << 20)
    else:
        Ct = block_channels
    assert C % Ct == 0, (C, Ct)

    # Batch block: sized from the REAL working set (double-buffered input + output,
    # scratch and in-kernel f32 temporaries), generation-aware target.
    slab = HW * 4
    per_image_work = (2 * Ct * HW * in_item + 2 * HW * out_item
                      + 2 * slab + 28 * slab + 8 * HW * 4)
    if block_batch is None:
        target = (24 << 20) if vmem_cap >= (128 << 20) else (12 << 20)
        bt = _pick_block_batch(B, per_image_work, target, want_two_steps)
    else:
        bt = block_batch
    assert B % bt == 0, (B, bt)

    # Lane- and sublane-dense output block when the (8,128) rule allows it.
    dense_out = (bt % 8 == 0) or (bt == B)
    if dense_out:
        out_shape = jax.ShapeDtypeStruct((B, HW), out_dtype)
        out_spec = pl.BlockSpec((bt, HW), lambda b, c: (b, 0))
    else:
        out_shape = jax.ShapeDtypeStruct((B, 1, HW), out_dtype)
        out_spec = pl.BlockSpec((bt, 1, HW), lambda b, c: (b, 0, 0))

    need = bt * per_image_work + (1 << 20)
    vmem_limit = int(min(max(int(need * 1.5) + (2 << 20), 16 << 20), 48 << 20))

    cost = pl.CostEstimate(
        flops=int(B * HW * (2 * C + 60)),
        transcendentals=int(B * HW),
        bytes_accessed=int(B * C * HW * in_item + B * HW * out_item),
    )

    # TODO(synk): if a trace shows exposed DMA gaps for very large C, bump the input
    # BlockSpec to pipeline_mode=pl.Buffered(3) (costs VMEM; measure first).
    out = pl.pallas_call(
        _make_kernel(C, Ct, H, W),
        out_shape=out_shape,
        grid=(B // bt, C // Ct),
        in_specs=[
            pl.BlockSpec((bt, Ct, HW), lambda b, c: (b, c, 0)),
            pl.BlockSpec(memory_space=pltpu.MemorySpace.SMEM),
        ],
        out_specs=out_spec,
        scratch_shapes=[pltpu.VMEM((bt, HW), jnp.float32),
                        pltpu.VMEM((bt, HW), jnp.float32)],
        compiler_params=pltpu.CompilerParams(
            dimension_semantics=("parallel", "arbitrary"),
            vmem_limit_bytes=vmem_limit,
        ),
        cost_estimate=cost,
    )(x_flat, w_flat)
    return out.reshape(B, 1, H, W)


def _reference(x, w):
    """Pure-JAX reference mirroring the PyTorch forward exactly."""
    pooled = jax.lax.reduce_window(
        x, -jnp.inf, jax.lax.max,
        window_dimensions=(1, 1, 3, 3), window_strides=(1, 1, 1, 1),
        padding=[(0, 0), (0, 0), (1, 1), (1, 1)])
    pool_out = jnp.max(pooled, axis=1, keepdims=True)
    avg_out = jnp.mean(x, axis=1, keepdims=True)
    max_out = jnp.max(x, axis=1, keepdims=True)
    feat = jnp.concatenate([avg_out, max_out, pool_out], axis=1)
    out = jax.lax.conv_general_dilated(
        feat, w, window_strides=(1, 1), padding=[(1, 1), (1, 1)],
        dimension_numbers=("NCHW", "OIHW", "NCHW"))
    return jax.nn.sigmoid(out)


if __name__ == "__main__":
    key = jax.random.PRNGKey(0)
    kx, kw = jax.random.split(key)

    B, C, H, W = 2, 4, 16, 16
    x = jax.random.normal(kx, (B, C, H, W), dtype=jnp.float32)

    # Conv2d(3, 1, 3, bias=False) weight, shape (1, 3, 3, 3), bound 1/sqrt(27).
    bound = 1.0 / jnp.sqrt(27.0)
    conv_weight = jax.random.uniform(
        kw, (1, 3, 3, 3), minval=-bound, maxval=bound, dtype=jnp.float32)

    out = spatial_attention(x, conv_weight)
    out = jax.block_until_ready(out)

    ref = _reference(x, conv_weight)
    assert out.shape == (B, 1, H, W), out.shape
    assert jnp.allclose(out, ref, atol=1e-5, rtol=1e-5), float(
        jnp.max(jnp.abs(out - ref)))

    print("KERNEL_OK")
</pallas_src>

<mosaic_0001>
module attributes {stable_mosaic.version = 11 : i64} {
  func.func @kernel(%arg0: i32, %arg1: i32, %arg2: memref<1x4x256xf32, #tpu.memory_space<vmem>>, %arg3: memref<27xf32, #tpu.memory_space<smem>>, %arg4: memref<1x1x256xf32, #tpu.memory_space<vmem>>, %arg5: memref<1x256xf32, #tpu.memory_space<vmem>>, %arg6: memref<1x256xf32, #tpu.memory_space<vmem>>) attributes {dimension_semantics = [#tpu.dimension_semantics<parallel>, #tpu.dimension_semantics<arbitrary>], iteration_bounds = array<i64: 2, 1>, scalar_prefetch = 0 : i64, scratch_operands = 2 : i64, tpu.core_type = #tpu.core_type<tc>, window_params = [{transform_indices = @transform_0, window_bounds = array<i64: 1, 4, 256>}, {transform_indices = @transform_1, window_bounds = array<i64: 27>}, {transform_indices = @transform_2, window_bounds = array<i64: 1, 1, 256>}]} {
    %c0_i32 = arith.constant 0 : i32
    %0 = arith.cmpi eq, %arg1, %c0_i32 : i32
    %1 = arith.extui %0 : i1 to i32
    %c0_i32_0 = arith.constant 0 : i32
    %2 = arith.cmpi ne, %1, %c0_i32_0 : i32
    scf.if %2 {
      %cst_14 = arith.constant 0.000000e+00 : f32
      %15 = vector.broadcast %cst_14 : f32 to vector<1x256xf32>
      %c0_15 = arith.constant 0 : index
      %c0_16 = arith.constant 0 : index
      %16 = vector.load %arg5[%c0_15, %c0_16] : memref<1x256xf32, #tpu.memory_space<vmem>>, vector<1x256xf32>
      tpu.vector_store %arg5[%c0_15, %c0_16], %15 {strides = array<i32>} : memref<1x256xf32, #tpu.memory_space<vmem>>, vector<1x256xf32>,
      %cst_17 = arith.constant 0xFF800000 : f32
      %17 = vector.broadcast %cst_17 : f32 to vector<1x256xf32>
      %c0_18 = arith.constant 0 : index
      %c0_19 = arith.constant 0 : index
      %18 = vector.load %arg6[%c0_18, %c0_19] : memref<1x256xf32, #tpu.memory_space<vmem>>, vector<1x256xf32>
      tpu.vector_store %arg6[%c0_18, %c0_19], %17 {strides = array<i32>} : memref<1x256xf32, #tpu.memory_space<vmem>>, vector<1x256xf32>,
    } else {
    }
    %c0 = arith.constant 0 : index
    %c0_1 = arith.constant 0 : index
    %c0_2 = arith.constant 0 : index
    %3 = vector.load %arg2[%c0, %c0_1, %c0_2] : memref<1x4x256xf32, #tpu.memory_space<vmem>>, vector<1x4x256xf32>
    %cst = arith.constant dense<0.000000e+00> : vector<1x256xf32>
    %4 = vector.multi_reduction <add>, %3, %cst [1] : vector<1x4x256xf32> to vector<1x256xf32>
    %cst_3 = arith.constant dense<0xFF800000> : vector<1x256xf32>
    %5 = vector.multi_reduction <maximumf>, %3, %cst_3 [1] : vector<1x4x256xf32> to vector<1x256xf32>
    %c0_4 = arith.constant 0 : index
    %c0_5 = arith.constant 0 : index
    %6 = vector.load %arg5[%c0_4, %c0_5] : memref<1x256xf32, #tpu.memory_space<vmem>>, vector<1x256xf32>
    %7 = arith.addf %6, %4 : vector<1x256xf32>
    %c0_6 = arith.constant 0 : index
    %c0_7 = arith.constant 0 : index
    %8 = vector.load %arg5[%c0_6, %c0_7] : memref<1x256xf32, #tpu.memory_space<vmem>>, vector<1x256xf32>
    tpu.vector_store %arg5[%c0_6, %c0_7], %7 {strides = array<i32>} : memref<1x256xf32, #tpu.memory_space<vmem>>, vector<1x256xf32>,
    %c0_8 = arith.constant 0 : index
    %c0_9 = arith.constant 0 : index
    %9 = vector.load %arg6[%c0_8, %c0_9] : memref<1x256xf32, #tpu.memory_space<vmem>>, vector<1x256xf32>
    %10 = arith.maximumf %9, %5 : vector<1x256xf32>
    %c0_10 = arith.constant 0 : index
    %c0_11 = arith.constant 0 : index
    %11 = vector.load %arg6[%c0_10, %c0_11] : memref<1x256xf32, #tpu.memory_space<vmem>>, vector<1x256xf32>
    tpu.vector_store %arg6[%c0_10, %c0_11], %10 {strides = array<i32>} : memref<1x256xf32, #tpu.memory_space<vmem>>, vector<1x256xf32>,
    %c0_i32_12 = arith.constant 0 : i32
    %12 = arith.cmpi eq, %arg1, %c0_i32_12 : i32
    %13 = arith.extui %12 : i1 to i32
    %c0_i32_13 = arith.constant 0 : i32
    %14 = arith.cmpi ne, %13, %c0_i32_13 : i32
    scf.if %14 {
      %c0_14 = arith.constant 0 : index
      %c0_15 = arith.constant 0 : index
      %15 = vector.load %arg5[%c0_14, %c0_15] : memref<1x256xf32, #tpu.memory_space<vmem>>, vector<1x256xf32>
      %cst_16 = arith.constant 2.500000e-01 : f32
      %16 = vector.broadcast %cst_16 : f32 to vector<1x256xf32>
      %17 = arith.mulf %15, %16 : vector<1x256xf32>
      %c0_17 = arith.constant 0 : index
      %c0_18 = arith.constant 0 : index
      %18 = vector.load %arg6[%c0_17, %c0_18] : memref<1x256xf32, #tpu.memory_space<vmem>>, vector<1x256xf32>
      %19 = tpu.iota {dimensions = array<i32: 1>} : vector<1x256xi32>
      %c15_i32 = arith.constant 15 : i32
      %20 = vector.broadcast %c15_i32 : i32 to vector<1x256xi32>
      %21 = arith.andi %19, %20 : vector<1x256xi32>
      %c16_i32 = arith.constant 16 : i32
      %22 = vector.broadcast %c16_i32 : i32 to vector<1x256xi32>
      %23 = arith.cmpi sge, %19, %22 : vector<1x256xi32>
      %c240_i32 = arith.constant 240 : i32
      %24 = vector.broadcast %c240_i32 : i32 to vector<1x256xi32>
      %25 = arith.cmpi slt, %19, %24 : vector<1x256xi32>
      %c1_i32 = arith.constant 1 : i32
      %26 = vector.broadcast %c1_i32 : i32 to vector<1x256xi32>
      %27 = arith.cmpi sge, %21, %26 : vector<1x256xi32>
      %c15_i32_19 = arith.constant 15 : i32
      %28 = vector.broadcast %c15_i32_19 : i32 to vector<1x256xi32>
      %29 = arith.cmpi slt, %21, %28 : vector<1x256xi32>
      %30 = arith.extui %23 : vector<1x256xi1> to vector<1x256xi32>
      %31 = arith.sitofp %30 : vector<1x256xi32> to vector<1x256xf32>
      %32 = arith.extui %25 : vector<1x256xi1> to vector<1x256xi32>
      %33 = arith.sitofp %32 : vector<1x256xi32> to vector<1x256xf32>
      %34 = arith.extui %27 : vector<1x256xi1> to vector<1x256xi32>
      %35 = arith.sitofp %34 : vector<1x256xi32> to vector<1x256xf32>
      %36 = arith.extui %29 : vector<1x256xi1> to vector<1x256xi32>
      %37 = arith.sitofp %36 : vector<1x256xi32> to vector<1x256xf32>
      %c16_i32_20 = arith.constant 16 : i32
      %38 = tpu.dynamic_rotate %17 by %c16_i32_20 dim 1 : vector<1x256xf32>, i32 -> vector<1x256xf32>
      %39 = arith.mulf %38, %31 : vector<1x256xf32>
      %c240_i32_21 = arith.constant 240 : i32
      %40 = tpu.dynamic_rotate %17 by %c240_i32_21 dim 1 : vector<1x256xf32>, i32 -> vector<1x256xf32>
      %41 = arith.mulf %40, %33 : vector<1x256xf32>
      %c16_i32_22 = arith.constant 16 : i32
      %42 = tpu.dynamic_rotate %18 by %c16_i32_22 dim 1 : vector<1x256xf32>, i32 -> vector<1x256xf32>
      %c240_i32_23 = arith.constant 240 : i32
      %43 = tpu.dynamic_rotate %18 by %c240_i32_23 dim 1 : vector<1x256xf32>, i32 -> vector<1x256xf32>
      %44 = arith.mulf %42, %31 : vector<1x256xf32>
      %45 = arith.mulf %43, %33 : vector<1x256xf32>
      %cst_24 = arith.constant 0xFF800000 : f32
      %46 = vector.broadcast %cst_24 : f32 to vector<1x256xf32>
      %47 = arith.select %23, %42, %46 : vector<1x256xi1>, vector<1x256xf32>
      %cst_25 = arith.constant 0xFF800000 : f32
      %48 = vector.broadcast %cst_25 : f32 to vector<1x256xf32>
      %49 = arith.select %25, %43, %48 : vector<1x256xi1>, vector<1x256xf32>
      %50 = arith.maximumf %47, %49 : vector<1x256xf32>
      %51 = arith.maximumf %18, %50 : vector<1x256xf32>
      %c0_26 = arith.constant 0 : index
      %52 = memref.load %arg3[%c0_26] : memref<27xf32, #tpu.memory_space<smem>>
      %53 = vector.broadcast %52 : f32 to vector<1x256xf32>
      %54 = arith.mulf %53, %39 : vector<1x256xf32>
      %c3 = arith.constant 3 : index
      %55 = memref.load %arg3[%c3] : memref<27xf32, #tpu.memory_space<smem>>
      %56 = vector.broadcast %55 : f32 to vector<1x256xf32>
      %57 = arith.mulf %56, %17 : vector<1x256xf32>
      %58 = arith.addf %54, %57 : vector<1x256xf32>
      %c6 = arith.constant 6 : index
      %59 = memref.load %arg3[%c6] : memref<27xf32, #tpu.memory_space<smem>>
      %60 = vector.broadcast %59 : f32 to vector<1x256xf32>
      %61 = arith.mulf %60, %41 : vector<1x256xf32>
      %62 = arith.addf %58, %61 : vector<1x256xf32>
      %c9 = arith.constant 9 : index
      %63 = memref.load %arg3[%c9] : memref<27xf32, #tpu.memory_space<smem>>
      %64 = vector.broadcast %63 : f32 to vector<1x256xf32>
      %65 = arith.mulf %64, %44 : vector<1x256xf32>
      %66 = arith.addf %62, %65 : vector<1x256xf32>
      %c12 = arith.constant 12 : index
      %67 = memref.load %arg3[%c12] : memref<27xf32, #tpu.memory_space<smem>>
      %68 = vector.broadcast %67 : f32 to vector<1x256xf32>
      %69 = arith.mulf %68, %18 : vector<1x256xf32>
      %70 = arith.addf %66, %69 : vector<1x256xf32>
      %c15 = arith.constant 15 : index
      %71 = memref.load %arg3[%c15] : memref<27xf32, #tpu.memory_space<smem>>
      %72 = vector.broadcast %71 : f32 to vector<1x256xf32>
      %73 = arith.mulf %72, %45 : vector<1x256xf32>
      %74 = arith.addf %70, %73 : vector<1x256xf32>
      %c1 = arith.constant 1 : index
      %75 = memref.load %arg3[%c1] : memref<27xf32, #tpu.memory_space<smem>>
      %76 = vector.broadcast %75 : f32 to vector<1x256xf32>
      %77 = arith.mulf %76, %39 : vector<1x256xf32>
      %c4 = arith.constant 4 : index
      %78 = memref.load %arg3[%c4] : memref<27xf32, #tpu.memory_space<smem>>
      %79 = vector.broadcast %78 : f32 to vector<1x256xf32>
      %80 = arith.mulf %79, %17 : vector<1x256xf32>
      %81 = arith.addf %77, %80 : vector<1x256xf32>
      %c7 = arith.constant 7 : index
      %82 = memref.load %arg3[%c7] : memref<27xf32, #tpu.memory_space<smem>>
      %83 = vector.broadcast %82 : f32 to vector<1x256xf32>
      %84 = arith.mulf %83, %41 : vector<1x256xf32>
      %85 = arith.addf %81, %84 : vector<1x256xf32>
      %c10 = arith.constant 10 : index
      %86 = memref.load %arg3[%c10] : memref<27xf32, #tpu.memory_space<smem>>
      %87 = vector.broadcast %86 : f32 to vector<1x256xf32>
      %88 = arith.mulf %87, %44 : vector<1x256xf32>
      %89 = arith.addf %85, %88 : vector<1x256xf32>
      %c13 = arith.constant 13 : index
      %90 = memref.load %arg3[%c13] : memref<27xf32, #tpu.memory_space<smem>>
      %91 = vector.broadcast %90 : f32 to vector<1x256xf32>
      %92 = arith.mulf %91, %18 : vector<1x256xf32>
      %93 = arith.addf %89, %92 : vector<1x256xf32>
      %c16 = arith.constant 16 : index
      %94 = memref.load %arg3[%c16] : memref<27xf32, #tpu.memory_space<smem>>
      %95 = vector.broadcast %94 : f32 to vector<1x256xf32>
      %96 = arith.mulf %95, %45 : vector<1x256xf32>
      %97 = arith.addf %93, %96 : vector<1x256xf32>
      %c2 = arith.constant 2 : index
      %98 = memref.load %arg3[%c2] : memref<27xf32, #tpu.memory_space<smem>>
      %99 = vector.broadcast %98 : f32 to vector<1x256xf32>
      %100 = arith.mulf %99, %39 : vector<1x256xf32>
      %c5 = arith.constant 5 : index
      %101 = memref.load %arg3[%c5] : memref<27xf32, #tpu.memory_space<smem>>
      %102 = vector.broadcast %101 : f32 to vector<1x256xf32>
      %103 = arith.mulf %102, %17 : vector<1x256xf32>
      %104 = arith.addf %100, %103 : vector<1x256xf32>
      %c8 = arith.constant 8 : index
      %105 = memref.load %arg3[%c8] : memref<27xf32, #tpu.memory_space<smem>>
      %106 = vector.broadcast %105 : f32 to vector<1x256xf32>
      %107 = arith.mulf %106, %41 : vector<1x256xf32>
      %108 = arith.addf %104, %107 : vector<1x256xf32>
      %c11 = arith.constant 11 : index
      %109 = memref.load %arg3[%c11] : memref<27xf32, #tpu.memory_space<smem>>
      %110 = vector.broadcast %109 : f32 to vector<1x256xf32>
      %111 = arith.mulf %110, %44 : vector<1x256xf32>
      %112 = arith.addf %108, %111 : vector<1x256xf32>
      %c14 = arith.constant 14 : index
      %113 = memref.load %arg3[%c14] : memref<27xf32, #tpu.memory_space<smem>>
      %114 = vector.broadcast %113 : f32 to vector<1x256xf32>
      %115 = arith.mulf %114, %18 : vector<1x256xf32>
      %116 = arith.addf %112, %115 : vector<1x256xf32>
      %c17 = arith.constant 17 : index
      %117 = memref.load %arg3[%c17] : memref<27xf32, #tpu.memory_space<smem>>
      %118 = vector.broadcast %117 : f32 to vector<1x256xf32>
      %119 = arith.mulf %118, %45 : vector<1x256xf32>
      %120 = arith.addf %116, %119 : vector<1x256xf32>
      %c1_i32_27 = arith.constant 1 : i32
      %121 = tpu.dynamic_rotate %74 by %c1_i32_27 dim 1 : vector<1x256xf32>, i32 -> vector<1x256xf32>
      %122 = arith.mulf %121, %35 : vector<1x256xf32>
      %123 = arith.addf %97, %122 : vector<1x256xf32>
      %c255_i32 = arith.constant 255 : i32
      %124 = tpu.dynamic_rotate %120 by %c255_i32 dim 1 : vector<1x256xf32>, i32 -> vector<1x256xf32>
      %125 = arith.mulf %124, %37 : vector<1x256xf32>
      %126 = arith.addf %123, %125 : vector<1x256xf32>
      %c1_i32_28 = arith.constant 1 : i32
      %127 = tpu.dynamic_rotate %51 by %c1_i32_28 dim 1 : vector<1x256xf32>, i32 -> vector<1x256xf32>
      %cst_29 = arith.constant 0xFF800000 : f32
      %128 = vector.broadcast %cst_29 : f32 to vector<1x256xf32>
      %129 = arith.select %27, %127, %128 : vector<1x256xi1>, vector<1x256xf32>
      %c255_i32_30 = arith.constant 255 : i32
      %130 = tpu.dynamic_rotate %51 by %c255_i32_30 dim 1 : vector<1x256xf32>, i32 -> vector<1x256xf32>
      %cst_31 = arith.constant 0xFF800000 : f32
      %131 = vector.broadcast %cst_31 : f32 to vector<1x256xf32>
      %132 = arith.select %29, %130, %131 : vector<1x256xi1>, vector<1x256xf32>
      %133 = arith.maximumf %129, %132 : vector<1x256xf32>
      %134 = arith.maximumf %51, %133 : vector<1x256xf32>
      %c16_i32_32 = arith.constant 16 : i32
      %135 = tpu.dynamic_rotate %134 by %c16_i32_32 dim 1 : vector<1x256xf32>, i32 -> vector<1x256xf32>
      %136 = arith.mulf %135, %31 : vector<1x256xf32>
      %c240_i32_33 = arith.constant 240 : i32
      %137 = tpu.dynamic_rotate %134 by %c240_i32_33 dim 1 : vector<1x256xf32>, i32 -> vector<1x256xf32>
      %138 = arith.mulf %137, %33 : vector<1x256xf32>
      %c18 = arith.constant 18 : index
      %139 = memref.load %arg3[%c18] : memref<27xf32, #tpu.memory_space<smem>>
      %140 = vector.broadcast %139 : f32 to vector<1x256xf32>
      %141 = arith.mulf %140, %136 : vector<1x256xf32>
      %c21 = arith.constant 21 : index
      %142 = memref.load %arg3[%c21] : memref<27xf32, #tpu.memory_space<smem>>
      %143 = vector.broadcast %142 : f32 to vector<1x256xf32>
      %144 = arith.mulf %143, %134 : vector<1x256xf32>
      %145 = arith.addf %141, %144 : vector<1x256xf32>
      %c24 = arith.constant 24 : index
      %146 = memref.load %arg3[%c24] : memref<27xf32, #tpu.memory_space<smem>>
      %147 = vector.broadcast %146 : f32 to vector<1x256xf32>
      %148 = arith.mulf %147, %138 : vector<1x256xf32>
      %149 = arith.addf %145, %148 : vector<1x256xf32>
      %c19 = arith.constant 19 : index
      %150 = memref.load %arg3[%c19] : memref<27xf32, #tpu.memory_space<smem>>
      %151 = vector.broadcast %150 : f32 to vector<1x256xf32>
      %152 = arith.mulf %151, %136 : vector<1x256xf32>
      %c22 = arith.constant 22 : index
      %153 = memref.load %arg3[%c22] : memref<27xf32, #tpu.memory_space<smem>>
      %154 = vector.broadcast %153 : f32 to vector<1x256xf32>
      %155 = arith.mulf %154, %134 : vector<1x256xf32>
      %156 = arith.addf %152, %155 : vector<1x256xf32>
      %c25 = arith.constant 25 : index
      %157 = memref.load %arg3[%c25] : memref<27xf32, #tpu.memory_space<smem>>
      %158 = vector.broadcast %157 : f32 to vector<1x256xf32>
      %159 = arith.mulf %158, %138 : vector<1x256xf32>
      %160 = arith.addf %156, %159 : vector<1x256xf32>
      %c20 = arith.constant 20 : index
      %161 = memref.load %arg3[%c20] : memref<27xf32, #tpu.memory_space<smem>>
      %162 = vector.broadcast %161 : f32 to vector<1x256xf32>
      %163 = arith.mulf %162, %136 : vector<1x256xf32>
      %c23 = arith.constant 23 : index
      %164 = memref.load %arg3[%c23] : memref<27xf32, #tpu.memory_space<smem>>
      %165 = vector.broadcast %164 : f32 to vector<1x256xf32>
      %166 = arith.mulf %165, %134 : vector<1x256xf32>
      %167 = arith.addf %163, %166 : vector<1x256xf32>
      %c26 = arith.constant 26 : index
      %168 = memref.load %arg3[%c26] : memref<27xf32, #tpu.memory_space<smem>>
      %169 = vector.broadcast %168 : f32 to vector<1x256xf32>
      %170 = arith.mulf %169, %138 : vector<1x256xf32>
      %171 = arith.addf %167, %170 : vector<1x256xf32>
      %172 = arith.addf %126, %160 : vector<1x256xf32>
      %c1_i32_34 = arith.constant 1 : i32
      %173 = tpu.dynamic_rotate %149 by %c1_i32_34 dim 1 : vector<1x256xf32>, i32 -> vector<1x256xf32>
      %174 = arith.mulf %173, %35 : vector<1x256xf32>
      %175 = arith.addf %172, %174 : vector<1x256xf32>
      %c255_i32_35 = arith.constant 255 : i32
      %176 = tpu.dynamic_rotate %171 by %c255_i32_35 dim 1 : vector<1x256xf32>, i32 -> vector<1x256xf32>
      %177 = arith.mulf %176, %37 : vector<1x256xf32>
      %178 = arith.addf %175, %177 : vector<1x256xf32>
      %179 = arith.negf %178 : vector<1x256xf32>
      %180 = math.exp %179 : vector<1x256xf32>
      %cst_36 = arith.constant 1.000000e+00 : f32
      %181 = vector.broadcast %cst_36 : f32 to vector<1x256xf32>
      %182 = arith.addf %181, %180 : vector<1x256xf32>
      %183 = arith.divf %181, %182 : vector<1x256xf32>
      %184 = vector.shape_cast %183 : vector<1x256xf32> to vector<1x1x256xf32>
      %c0_37 = arith.constant 0 : index
      %c0_38 = arith.constant 0 : index
      %c0_39 = arith.constant 0 : index
      %185 = vector.load %arg4[%c0_37, %c0_38, %c0_39] : memref<1x1x256xf32, #tpu.memory_space<vmem>>, vector<1x1x256xf32>
      tpu.vector_store %arg4[%c0_37, %c0_38, %c0_39], %184 {strides = array<i32>} : memref<1x1x256xf32, #tpu.memory_space<vmem>>, vector<1x1x256xf32>,
    } else {
    }
    return
  }
  func.func @transform_0(%arg0: i32, %arg1: i32) -> (i32, i32, i32) {
    %c0_i32 = arith.constant 0 : i32
    %c0_i32_0 = arith.constant 0 : i32
    return %arg0, %arg1, %c0_i32 : i32, i32, i32
  }
  func.func @transform_1(%arg0: i32, %arg1: i32) -> i32 {
    %c0_i32 = arith.constant 0 : i32
    %c0_i32_0 = arith.constant 0 : i32
    return %c0_i32 : i32
  }
  func.func @transform_2(%arg0: i32, %arg1: i32) -> (i32, i32, i32) {
    %c0_i32 = arith.constant 0 : i32
    %c0_i32_0 = arith.constant 0 : i32
    %c0_i32_1 = arith.constant 0 : i32
    return %arg0, %c0_i32, %c0_i32_0 : i32, i32, i32
  }
}

</mosaic_0001>

<bundles_post_ra>
// kernel: tpu_custom_call.1
= control target key start
LH: loop header
LB: loop body
LE: loop exit
PB: predicated region body
PF: predicated region fallthrough
CT: control target
= control target key end

     0   :  { %7 = vsyncpa [#allocation5], 0  ;;  %s1724_s0 = inlined_call_operand.hbm [shape: f32[2,4,256], index: 0, kind: input, shape index: {}]   ;;  %s1725_s1 = inlined_call_operand.vmem [shape: f32[27], index: 1, kind: input, shape index: {}]   ;;  %s1726_s2 = inlined_call_operand.hbm [shape: f32[2,1,256], index: 2, kind: output, shape index: {}]  }
   0x1   :  { %9 = vsyncpa [#allocation5 + $0x1], 0 }
   0x2   :  { %10 = vsyncpa [#allocation7], 0 }
   0x3   :  { %11 = vsyncpa [#allocation6], 0 }
   0x4   :  { %13 = vsyncpa [#allocation6 + $0x1], 0  ;;  %s1189_s9 = smov 0   ;;  %s1191_s10 = smov 0  }
   0x5   :  { %s1193_s11 = smov 0   ;;  %s1195_s12 = smov 0  }
   0x6   :  { %s1197_s13 = smov 0   ;;  %s1199_s14 = smov 0  }
   0x7 LB: > { %s893_s15 = sadd.s32 4294967295, %s1162_s14   ;;  %s894_s16 = sadd.s32 4294967294, %s1162_s14   ;;  %s1162_s14 = sphi %s1199_s14, %s19_s14   ;;  %s1158_s13 = sphi %s1197_s13, %s1759_s13   ;;  %s1154_s12 = sphi %s1195_s12, %s1758_s12   ;;  %s1150_s11 = sphi %s1193_s11, %s1757_s11   ;;  %s1146_s10 = sphi %s1191_s10, %s1756_s10   ;;  %s1142_s9 = sphi %s1189_s9, %s1755_s9  }
   0x8   : > { %p53_p0 = scmp.ne.s32.totalorder %s1146_s10, %s1142_s9  ;;  %p1223_p1 = scmp.eq.s32.totalorder %s893_s15, 0 }
   0x9   : > { %p1227_p2 = scmp.eq.s32.totalorder %s893_s15, 1  ;;  %p104_p3 = scmp.eq.s32.totalorder %s894_s16, 1 }
   0xa   : > { %p1233_p4 = por %p1223_p1, %p53_p0  ;;  %p895_p5 = scmp.ge.s32.totalorder %s1162_s14, 1 }
   0xb   : > { %p1238_p6 = por %p104_p3, %p53_p0  ;;  %p111_p7 = scmp.lt.s32.totalorder %s1162_s14, 3 }
   0xc   : > { %s1734_s19 = scalar_select %p1233_p4, 1, 0 }
   0xd   : > { %s1735_s20 = scalar_select %p1238_p6, 1, 0 }
   0xe   : > { %s124_s23 = sshll.u32 %s1725_s1, 4  ;;  %p1246_p8 = pnand %p895_p5, %p111_p7  ;;  %s125_s23 = int_to_ptr.vmem [resolvable:$true] %s124_s23 }
   0xf   : > { %s31_s26 = sadd.s32 1, %s1158_s13  ;;  %s40_s27 = sadd.s32 1, %s1150_s11 }
  0x10   : > { %p954_p10 = pneg %p1246_p8  ;;  %p33_p12 = scmp.ge.s32.totalorder %s31_s26, 2 }
  0x11   : > { %s1035_s28 = scalar_lea.vmem %s125_s23, 16  ;;  %p1043_p7 = scmp.lt.s32.totalorder %s125_s23, %s125_s23 }
  0x12   : > { %p1255_p11 = pnand %p954_p10, %p1223_p1  ;;  %p1036_p13 = scmp.ne.s32.totalorder %s125_s23, %s1035_s28 }
  0x13   : > { %p1044_p6 = scmp.lt.s32.totalorder %s1035_s28, %s1035_s28 }
  0x14   : > { %p1037_p0 = pneg %p1255_p11 }
  0x15   : > { %p1045_p9 = por %p1044_p6, %p1043_p7 }
  0x16   : > { %p1038_p3 = pnand %p1037_p0, %p1036_p13 }
  0x18   : > { %p1039_p5 = pneg %p1038_p3 }
  0x1a   : > { %p1046_p4 = pnand %p1045_p9, %p1039_p5 }
  0x1c   : > { %1049 = shalt.err (!%p1046_p4)
}
  0x1d   : > { %s1164_s29 = smov [#allocation8]   ;;  %s1761_s26 = smov (%p33_p12, %s31_s26), 0 }
  0x1e   : > { %957 = dma.vmem_to_smem (!%p1255_p11), %s125_s23, 16, %s1164_s29, [#allocation7]  }
  0x1f   : > { %p47_p10 = scmp.ne.s32.totalorder %s1150_s11, %s1146_s10  ;;  %p48_p6 = scmp.eq.s32.totalorder %s1162_s14, 0 }
  0x20   : > { %s35_s30 = ssub.s32 %s1158_s13, %s1761_s26  ;;  %p967_p4 = scmp.lt.s32.totalorder %s1162_s14, 2 }
  0x21   : > { %p38_p9 = scmp.eq.s32.totalorder %s35_s30, 0  ;;  %p49_p13 = por %p48_p6, %p47_p10 }
  0x22   : > { %p1275_p0 = por %p1227_p2, %p47_p10  ;;  %s135_s4 = sand.u32 1, %s1150_s11  }
  0x23   : > { %s1281_s5 = scalar_select %p38_p9, %s1150_s11, %s40_s27  }
  0x24   : > { %s898_s6 = sshll.u32 %s135_s4, 3  ;;  %s944_s7 = sshll.u32 %s1158_s13, 7 }
  0x25   : > { %s147_s16 = scalar_lea.hbm %s1724_s0, %s944_s7  ;;  %s139_s21 = scalar_lea.vmem [#allocation4], %s898_s6 }
  0x26   : > { %s149_s22 = sshll.u32 %s139_s21, 4  ;;  %p1287_p11 = pnand %p967_p4, %p49_p13  ;;  %s150_s22 = int_to_ptr.vmem [resolvable:$true] %s149_s22 }
  0x27   : > { %s136_s18 = scalar_lea.sflag [#allocation5], %s135_s4  ;;  %s1063_s25 = scalar_lea.vmem %s150_s22, 128 }
  0x28   : > { %p1052_p2 = pneg %p1287_p11  ;;  %p1064_p12 = scmp.ne.s32.totalorder %s150_s22, %s1063_s25 }
  0x29   : > { %s1165_s27 = smov [#allocation4]  }
  0x2a   : > { %p1066_p3 = pnand %p1064_p12, %p1052_p2  ;;  %s1068_s28 = sshll.u32 %s1165_s27, 4  ;;  %s1069_s28 = int_to_ptr.vmem [resolvable:$false] %s1068_s28 }
  0x2b   : > { %s1070_s29 = scalar_lea.vmem %s1069_s28, 256  ;;  %p1071_p7 = scmp.lt.s32.totalorder %s150_s22, %s1069_s28 }
  0x2c   : > { %p1067_p5 = pneg %p1066_p3  ;;  %p1072_p10 = scmp.lt.s32.totalorder %s1070_s29, %s1063_s25 }
  0x2e   : > { %p1073_p6 = por %p1072_p10, %p1071_p7 }
  0x30   : > { %p1074_p9 = pnand %p1073_p6, %p1067_p5 }
  0x32   : > { %1077 = shalt.err (!%p1074_p9)
}
  0x33   : > { %961 = dma.hbm_to_vmem [thread:$0]  (!%p1287_p11), %s147_s16, 128, %s150_s22, %s136_s18  }
  0x34   : > { %158 = sbr.rel (%p1246_p8) target bundleno = 665 (0x299), region = 28  ;;  %s1298_s30 = sand.u32 (!%p1246_p8), 1, %s1146_s10  }
  0x35   : > { %s902_s4 = sshll.u32 (!%p1246_p8), %s1298_s30, 3  ;;  %s161_s6 = scalar_lea.sflag (!%p1246_p8), [#allocation5], %s1298_s30 }
  0x36   : > { %s164_s7 = scalar_lea.vmem (!%p1246_p8), [#allocation4], %s902_s4  ;;  %p1740_p4 = scmp.ne.s32.totalorder (!%p1246_p8), %s1734_s19, 0 }
  0x39   : > { %1129 = dma.done.wait (%p1740_p4), %s161_s6, 128  }
  0x3a   : > { %1131 = vsyncadd (%p1740_p4), %s161_s6, 4294967168 }
  0x3b   : > { %1133 = dma.done.wait (%p1223_p1), [#allocation7], 16  }
  0x3c   : > { %1135 = vsyncadd (%p1223_p1), [#allocation7], 4294967280 }
  0x3d   : > { %173 = sfence }
  0x3e   : > { %v194_v0 = vlaneseq  ;;  %v200_v1 = vld [vmem:[%s164_s7] sm:$0xff]  ;;  %vm204_vm0 = vcmask 1043456   ;;  %v1166_v6 = vmov -inf   ;;  %v1167_v12 = vmov 1966171168   ;;  %s1169_s17 = smov 112  }
  0x3f   : > { %v202_v2 = vcombine.high %v200_v1, %v200_v1  ;;  %v219_v3 = vsel %vm204_vm0, %v200_v1, -inf  ;;  %v238_v13 = vunpack.c.l.s4 %v1167_v12  ;;  %v205_v24 = vsel %vm204_vm0, %v200_v1, 0.0  ;;  %s1170_s19 = smov 16   ;;  %s1730_s24 = smov 1  }
  0x40   : > { %vm1312_vm1 = vcmp.lt.s32.totalorder %v194_v0, 256  ;;  %v220_v5 = vrot.slane %v219_v3, 4  ;;  %v241_v19 = vshrl.u32 %v194_v0, 7  ;;  %v206_v26 = vrot.slane %v205_v24, 4  ;;  %s1728_s8 = smov 127   ;;  %s1400_s15 = sld [smem:[#allocation8 + $0xf]] }
  0x41   : > { %199 = vst.msk [vmem:[#allocation3] sm:$0x3] %vm1312_vm1, %v1166_v6  ;;  %v226_v7 = vsel %vm204_vm0, %v202_v2, -inf  ;;  %v239_v18 = vunpack.c.0.s8 %v238_v13  ;;  %v212_v25 = vsel %vm204_vm0, %v202_v2, 0.0  ;;  %v1168_v38 = vmov 0.0   ;;  %s1402_s16 = sld [smem:[#allocation8 + $0x10]] }
  0x42   : > { %v221_v8 = vmax.f32 %v219_v3, %v220_v5  ;;  %v227_v9 = vrot.slane %v226_v7, 4  ;;  %v213_v27 = vrot.slane %v212_v25, 4  ;;  %v207_v29 = vadd.f32 %v206_v26, %v205_v24  ;;  %198 = vst.msk [vmem:[#allocation2] sm:$0x3] %vm1312_vm1, %v1168_v38  ;;  %s1404_s21 = sld [smem:[#allocation8 + $0x11]] }
  0x43   : > { %v1320_v23 = vsub.s32 %v239_v18, %v241_v19  ;;  %v1331_v45 = vsub.s32 0, %v241_v19  ;;  %v1334_v47 = vsub.s32 1, %v241_v19  ;;  %v1350_v54 = vand.u32 127, %v194_v0  ;;  %s1406_s22 = sld [smem:[#allocation8 + $0x9]] }
  0x44   : > { %v222_v10 = vrot.slane %v221_v8, 2  ;;  %v228_v11 = vmax.f32 %v226_v7, %v227_v9  ;;  %v214_v30 = vadd.f32 %v213_v27, %v212_v25  ;;  %v208_v33 = vrot.slane %v207_v29, 2  ;;  %s1408_s23 = sld [smem:[#allocation8 + $0xa]] }
  0x45   : > { %v1353_v55 = vadd.s32 128, %v1350_v54  ;;  %vm338_vm2 = vcmp.lt.s32.totalorder %v1350_v54, 112  ;;  %vm329_vm3 = vcmp.lt.s32.totalorder %v1350_v54, 16  ;;  %vm290_vm5 = vcmp.ge.s32.totalorder %v1350_v54, 16  ;;  %s911_s18 = sld [smem:[#allocation8 + $0x3]] }
  0x46   : > { %v223_v14 = vmax.f32 %v221_v8, %v222_v10  ;;  %v229_v15 = vrot.slane %v228_v11, 2  ;;  %v215_v34 = vrot.slane %v214_v30, 2  ;;  %v209_v36 = vadd.f32 %v208_v33, %v207_v29  ;;  %s1410_s25 = sld [smem:[#allocation8 + $0xb]] }
  0x47   : > { %vm293_vm4 = vcmp.lt.s32.totalorder %v1353_v55, 240  ;;  %s1412_s27 = sld [smem:[#allocation8 + $0x4]]  ;;  %v288_v25 = vand.u32 15, %v1350_v54  ;;  %vm561_vm7 = vcmp.lt.s32.totalorder %v1350_v54, 1  ;;  %vm572_vm8 = vcmp.lt.s32.totalorder %v1350_v54, 127 }
  0x48   : > { %v224_v16 = vrot.slane %v223_v14, 1  ;;  %v230_v17 = vmax.f32 %v228_v11, %v229_v15  ;;  %v258_v32 = vld [vmem:[#allocation3] sm:$0x3]  ;;  %v216_v37 = vadd.f32 %v215_v34, %v214_v30  ;;  %v210_v40 = vrot.slane %v209_v36, 1  ;;  %s1414_s28 = sld [smem:[#allocation8]] }
  0x49   : > { %v233_v48 = vld [vmem:[#allocation2] sm:$0x3]  ;;  %s1416_s29 = sld [smem:[#allocation8 + $0x1]]  ;;  %v1421_v15 = vsel %vm290_vm5, 1.0, %v1168_v38  ;;  %v422_v18 = vstv %s1406_s22  ;;  %v552_v26 = vstv %s1404_s21  ;;  %vm1478_vm6 = vcmp.ge.s32.totalorder %v288_v25, 1 }
  0x4a   : > { %v225_v20 = vmax.f32 %v223_v14, %v224_v16  ;;  %v231_v21 = vrot.slane %v230_v17, 1  ;;  %v217_v41 = vrot.slane %v216_v37, 1  ;;  %v211_v42 = vadd.f32 %v210_v40, %v209_v36  ;;  %s1423_s4 = sld [smem:[#allocation8 + $0x2]] }
  0x4b   : > { %s1425_s6 = sld [smem:[#allocation8 + $0x5]]  ;;  %v1430_v16 = vsel %vm293_vm4, 1.0, %v1168_v38  ;;  %v476_v19 = vstv %s1408_s23  ;;  %vm1491_vm10 = vcmp.lt.s32.totalorder %v288_v25, 15 }
  0x4c   : > { %v232_v22 = vmax.f32 %v230_v17, %v231_v21  ;;  %v218_v43 = vadd.f32 %v217_v41, %v216_v37  ;;  %v444_v17 = vstv %s1400_s15  ;;  %s1433_s7 = sld [smem:[#allocation8 + $0x6]]  ;;  %v400_v21 = vstv %s911_s18 }
  0x4d   : > { %v530_v24 = vstv %s1410_s25  ;;  %v454_v29 = vstv %s1412_s27  ;;  %s1451_s22 = sld [smem:[#allocation8 + $0xe]] }
  0x4e   : > { %v261_v28 = vcombine.low %v225_v20, %v232_v22  ;;  %v236_v44 = vcombine.low %v211_v42, %v218_v43  ;;  %v498_v22 = vstv %s1402_s16  ;;  %s1476_s23 = sld [smem:[#allocation8 + $0x8]] }
  0x4f   : > { %s1485_s18 = sld [smem:[#allocation8 + $0xd]] }
  0x50   : > { %v268_v31 = vrot.slane %v261_v28, %v1320_v23  ;;  %v243_v46 = vrot.slane %v236_v44, %v1320_v23  ;;  %v289_v28 = vand.u32 15, %v1353_v55  ;;  %s929_s15 = sld [smem:[#allocation8 + $0x15]] }
  0x51   : > { %s935_s16 = sld [smem:[#allocation8 + $0x17]] }
  0x52   : > { %v275_v35 = vrot.slane %v268_v31, %v1320_v23  ;;  %v250_v50 = vrot.slane %v243_v46, %v1320_v23  ;;  %vm1487_vm9 = vcmp.ge.s32.totalorder %v289_v28, 1  ;;  %vm1495_vm11 = vcmp.lt.s32.totalorder %v289_v28, 15  ;;  %s1606_s21 = sld [smem:[#allocation8 + $0x13]] }
  0x53   : > { %s1608_s25 = sld [smem:[#allocation8 + $0x14]] }
  0x54   : > { %v277_v39 = vmax.f32 %v258_v32, %v275_v35  ;;  %v252_v52 = vadd.f32 %v250_v50, %v233_v48  ;;  %v508_v48 = vstv %s1425_s6  ;;  %v396_v50 = vstv %s1414_s28  ;;  %s1610_s27 = sld [smem:[#allocation8 + $0x18]]  ;;  %s945_s6 = sshll.u32 %s1154_s12, 5 }
  0x55   : > { %v482_v28 = vstv %s1485_s18  ;;  %s1612_s28 = sld [smem:[#allocation8 + $0x19]]  ;;  %s1173_s12 = smov [#allocation9]  }
  0x56   : > { %278 = vst.msk [vmem:[#allocation3] sm:$0x3] %vm1312_vm1, %v277_v39  ;;  %257 = vst.msk [vmem:[#allocation2] sm:$0x3] %vm1312_vm1, %v252_v52  ;;  %v450_v52 = vstv %s1416_s29  ;;  %s1614_s29 = sld [smem:[#allocation8 + $0x1a]] }
  0x5d   : > { %v1336_v49 = vld [vmem:[#allocation3] sm:$0x3]  ;;  %v282_v9 = vld [vmem:[#allocation2] sm:$0x3] }
  0x5e   : > { %v347_v51 = vrot.slane %v1336_v49, %v1331_v45  ;;  %v351_v53 = vrot.slane %v1336_v49, %v1334_v47  ;;  %v1388_v12 = vmul.f32 0.25, %v282_v9 }
  0x60   : > { %360 = vrot.lane.b32.xlu1 %v347_v51, %s1169_s17  ;;  %354 = vrot.lane.b32.xlu0 %v347_v51, %s1170_s19  ;;  %v322_v13 = vrot.slane %v1388_v12, %v1334_v47  ;;  %v318_v14 = vrot.slane %v1388_v12, %v1331_v45  ;;  %v1465_v33 = vmul.f32 %v400_v21, %v1388_v12 }
  0x61   : > { %v455_v42 = vmul.f32 %v454_v29, %v1388_v12 }
  0x62   : > { %v410_v51 = vrot.slane %v1465_v33, %v1334_v47 }
  0x64   : > { %362 = vrot.lane.b32.xlu1 %v351_v53, %s1169_s17  ;;  %356 = vrot.lane.b32.xlu0 %v351_v53, %s1170_s19  ;;  %v406_v53 = vrot.slane %v1465_v33, %v1331_v45 }
  0xd2   : > { %v361_v56 = vpop.permute.xlu1 %360  ;;  %v355_v57 = vpop.permute.xlu0 %354 }
  0xd6   : > { %v363_v58 = vpop.permute.xlu1 %362  ;;  %v357_v59 = vpop.permute.xlu0 %356 }
  0xd7   : > { %v1361_v60 = vsel %vm338_vm2, %v361_v56, %v363_v58  ;;  %v365_v61 = vsel %vm338_vm2, %v363_v58, %v361_v56  ;;  %v1367_v62 = vsel %vm329_vm3, %v355_v57, %v357_v59  ;;  %v359_v63 = vsel %vm329_vm3, %v357_v59, %v355_v57 }
  0xd8   : > { %v373_v0 = vsel %vm293_vm4, %v365_v61, -inf  ;;  %v370_v1 = vsel %vm290_vm5, %v359_v63, -inf  ;;  %v366_v20 = vmul.f32 %v1421_v15, %v359_v63  ;;  %v1447_v27 = vmul.f32 %v1430_v16, %v365_v61 }
  0xd9   : > { %v375_v2 = vmax.f32 %v1367_v62, %v373_v0  ;;  %v374_v3 = vmax.f32 %v370_v1, %v1361_v60  ;;  %v1456_v30 = vmul.f32 %v444_v17, %v1361_v60  ;;  %v1459_v31 = vmul.f32 %v422_v18, %v1367_v62 }
  0xda   : > { %v1462_v32 = vmul.f32 %v476_v19, %v1367_v62  ;;  %v1467_v34 = vmul.f32 %v422_v18, %v366_v20  ;;  %v1469_v35 = vmul.f32 %v476_v19, %v366_v20  ;;  %v1471_v36 = vmul.f32 %v530_v24, %v366_v20 }
  0xdb   : > { %v378_v5 = vcombine.low %v374_v3, %v375_v2  ;;  %v1474_v37 = vmul.f32 %v530_v24, %v1367_v62  ;;  %v464_v57 = vrot.slane %v455_v42, %v1334_v47  ;;  %v504_v58 = vstv %s1423_s4  ;;  %s904_s4 = sshll.u32 %s1298_s30, 1 }
  0xdc   : > { %v509_v62 = vmul.f32 %v508_v48, %v1388_v12  ;;  %v416_v63 = vstv %s1433_s7  ;;  %v460_v0 = vrot.slane %v455_v42, %v1331_v45  ;;  %v524_v24 = vstv %s1476_s23  ;;  %s189_s7 = scalar_lea.vmem [#allocation9], %s904_s4 }
  0xdd   : > { %v385_v6 = vrot.slane %v378_v5, %v1320_v23 }
  0xde   : > { %v514_v21 = vrot.slane %v509_v62, %v1331_v45 }
  0xdf   : > { %v392_v7 = vrot.slane %v385_v6, %v1320_v23  ;;  %v536_v6 = vstv %s1451_s22  ;;  %s800_s22 = sshll.u32 %s189_s7, 4  ;;  %s801_s22 = int_to_ptr.vmem [resolvable:$true] %s800_s22 }
  0xe0   : > { %v1537_v25 = vmul.f32 %v536_v6, %v1336_v49 }
  0xe1   : > { %v1380_v8 = vmax.f32 %v1336_v49, %v392_v7 }
  0xe3   : > { %v587_v10 = vrot.slane %v1380_v8, %v1334_v47  ;;  %v583_v11 = vrot.slane %v1380_v8, %v1331_v45 }
  0xe5   : > { %592 = vrot.lane.b32.xlu1 %v587_v10, %s1730_s24  ;;  %590 = vrot.lane.b32.xlu0 %v583_v11, %s1730_s24  ;;  %s1443_s24 = sld [smem:[#allocation8 + $0xc]] }
  0xe9   : > { %600 = vrot.lane.b32.xlu1 %v587_v10, %s1728_s8  ;;  %598 = vrot.lane.b32.xlu0 %v583_v11, %s1728_s8  ;;  %s1438_s8 = sld [smem:[#allocation8 + $0x7]] }
  0xeb   : > { %v428_v1 = vstv %s1443_s24  ;;  %s1752_s24 = smov 127  }
  0xec   : > { %v1532_v18 = vmul.f32 %v428_v1, %v1336_v49  ;;  %v483_v1 = vmul.f32 %v482_v28, %v1336_v49 }
  0xed   : > { %327 = vrot.lane.b32.xlu1 %v322_v13, %s1170_s19  ;;  %325 = vrot.lane.b32.xlu0 %v318_v14, %s1170_s19 }
  0xef   : > { %v470_v5 = vstv %s1438_s8  ;;  %s932_s8 = sld [smem:[#allocation8 + $0x16]] }
  0xf1   : > { %336 = vrot.lane.b32.xlu1 %v322_v13, %s1169_s17  ;;  %334 = vrot.lane.b32.xlu0 %v318_v14, %s1169_s17  ;;  %v518_v14 = vrot.slane %v509_v62, %v1334_v47  ;;  %v546_v62 = vrot.slane %v1537_v25, %v1334_v47 }
 0x157   : > { %v593_v39 = vpop.permute.xlu1 %592  ;;  %v591_v41 = vpop.permute.xlu0 %590 }
 0x158   : > { %v594_v55 = vsel %vm561_vm7, %v591_v41, %v593_v39  ;;  %v595_v56 = vsel %vm561_vm7, %v593_v39, %v591_v41  ;;  %v438_v41 = vrot.slane %v1532_v18, %v1334_v47 }
 0x159   : > { %v596_v7 = vsel %vm1478_vm6, %v595_v56, -inf  ;;  %v597_v9 = vsel %vm1487_vm9, %v594_v55, -inf }
 0x15b   : > { %v601_v59 = vpop.permute.xlu1 %600  ;;  %v599_v61 = vpop.permute.xlu0 %598 }
 0x15c   : > { %v602_v2 = vsel %vm572_vm8, %v599_v61, %v601_v59  ;;  %v603_v3 = vsel %vm572_vm8, %v601_v59, %v599_v61  ;;  %v434_v61 = vrot.slane %v1532_v18, %v1331_v45 }
 0x15d   : > { %v604_v10 = vsel %vm1491_vm10, %v602_v2, -inf  ;;  %v605_v11 = vsel %vm1495_vm11, %v603_v3, -inf }
 0x15e   : > { %v606_v12 = vmax.f32 %v596_v7, %v604_v10  ;;  %v607_v13 = vmax.f32 %v597_v9, %v605_v11 }
 0x15f   : > { %v328_v19 = vpop.permute.xlu1 %327  ;;  %v326_v20 = vpop.permute.xlu0 %325 }
 0x160   : > { %v610_v29 = vcombine.low %v606_v12, %v607_v13  ;;  %v330_v33 = vsel %vm329_vm3, %v326_v20, %v328_v19  ;;  %v331_v39 = vsel %vm329_vm3, %v328_v19, %v326_v20 }
 0x161   : > { %v332_v42 = vmul.f32 %v1421_v15, %v331_v39  ;;  %v398_v48 = vmul.f32 %v396_v50, %v330_v33  ;;  %v452_v55 = vmul.f32 %v450_v52, %v330_v33  ;;  %v506_v56 = vmul.f32 %v504_v58, %v330_v33 }
 0x162   : > { %v617_v59 = vrot.slane %v610_v29, %v1320_v23 }
 0x163   : > { %v397_v2 = vmul.f32 %v396_v50, %v332_v42  ;;  %v414_v3 = vadd.f32 %v410_v51, %v398_v48  ;;  %v451_v6 = vmul.f32 %v450_v52, %v332_v42  ;;  %v468_v7 = vadd.f32 %v464_v57, %v452_v55  ;;  %v337_v9 = vpop.permute.xlu1 %336  ;;  %v335_v10 = vpop.permute.xlu0 %334 }
 0x164   : > { %v624_v11 = vrot.slane %v617_v59, %v1320_v23  ;;  %v505_v12 = vmul.f32 %v504_v58, %v332_v42  ;;  %v522_v13 = vadd.f32 %v518_v14, %v506_v56  ;;  %v339_v19 = vsel %vm338_vm2, %v335_v10, %v337_v9 }
 0x165   : > { %v413_v20 = vadd.f32 %v406_v53, %v397_v2  ;;  %v467_v18 = vadd.f32 %v460_v0, %v451_v6  ;;  %v340_v29 = vsel %vm338_vm2, %v337_v9, %v335_v10  ;;  %v417_v33 = vmul.f32 %v416_v63, %v339_v19 }
 0x166   : > { %v1559_v49 = vmax.f32 %v1380_v8, %v624_v11  ;;  %v521_v50 = vadd.f32 %v514_v21, %v505_v12  ;;  %v342_v51 = vmul.f32 %v1430_v16, %v340_v29  ;;  %v471_v52 = vmul.f32 %v470_v5, %v339_v19 }
 0x167   : > { %v419_v57 = vadd.f32 %v417_v33, %v413_v20  ;;  %v525_v28 = vmul.f32 %v524_v24, %v339_v19  ;;  %v542_v58 = vrot.slane %v1537_v25, %v1331_v45  ;;  %v488_v14 = vrot.slane %v483_v1, %v1331_v45 }
 0x168   : > { %v418_v53 = vmul.f32 %v416_v63, %v342_v51  ;;  %v472_v0 = vmul.f32 %v470_v5, %v342_v51  ;;  %v473_v39 = vadd.f32 %v471_v52, %v467_v18  ;;  %v526_v42 = vmul.f32 %v524_v24, %v342_v51 }
 0x169   : > { %v527_v48 = vadd.f32 %v525_v28, %v521_v50  ;;  %v635_v8 = vrot.slane %v1559_v49, %v1334_v47  ;;  %v631_v21 = vrot.slane %v1559_v49, %v1331_v45  ;;  %v425_v55 = vadd.f32 %v1467_v34, %v419_v57 }
 0x16a   : > { %v420_v56 = vadd.f32 %v418_v53, %v414_v3  ;;  %v474_v25 = vadd.f32 %v472_v0, %v468_v7  ;;  %v479_v59 = vadd.f32 %v1469_v35, %v473_v39  ;;  %v528_v63 = vadd.f32 %v526_v42, %v522_v13 }
 0x16b   : > { %640 = vrot.lane.b32.xlu1 %v635_v8, %s1170_s19  ;;  %638 = vrot.lane.b32.xlu0 %v631_v21, %s1170_s19  ;;  %v441_v5 = vadd.f32 %v434_v61, %v425_v55  ;;  %v533_v24 = vadd.f32 %v1471_v36, %v527_v48  ;;  %v492_v2 = vrot.slane %v483_v1, %v1334_v47  ;;  %s1751_s19 = smov 1   ;;  %v681_v19 = vstv %s1606_s21 }
 0x16c   : > { %v499_v6 = vmul.f32 %v498_v22, %v1361_v60  ;;  %v480_v34 = vadd.f32 %v1462_v32, %v474_v25  ;;  %v426_v3 = vadd.f32 %v1459_v31, %v420_v56  ;;  %v534_v35 = vadd.f32 %v1474_v37, %v528_v63 }
 0x16d   : > { %v553_v7 = vmul.f32 %v552_v26, %v1361_v60  ;;  %v446_v9 = vmul.f32 %v444_v17, %v1447_v27  ;;  %v447_v61 = vadd.f32 %v1456_v30, %v441_v5  ;;  %v549_v36 = vadd.f32 %v542_v58, %v533_v24 }
 0x16e   : > { %v442_v10 = vadd.f32 %v438_v41, %v426_v3  ;;  %v550_v1 = vadd.f32 %v546_v62, %v534_v35  ;;  %v554_v11 = vmul.f32 %v552_v26, %v1447_v27  ;;  %v495_v12 = vadd.f32 %v488_v14, %v479_v59 }
 0x16f   : > { %v500_v31 = vmul.f32 %v498_v22, %v1447_v27  ;;  %648 = vrot.lane.b32.xlu1 %v635_v8, %s1169_s17  ;;  %646 = vrot.lane.b32.xlu0 %v631_v21, %s1169_s17  ;;  %v555_v60 = vadd.f32 %v553_v7, %v549_v36  ;;  %v496_v32 = vadd.f32 %v492_v2, %v480_v34  ;;  %s1604_s17 = sld [smem:[#allocation8 + $0x12]]  ;;  %v685_v22 = vstv %s932_s8  ;;  %s1078_s8 = scalar_lea.vmem %s801_s22, 32 }
 0x170   : > { %v448_v37 = vadd.f32 %v446_v9, %v442_v10  ;;  %v556_v17 = vadd.f32 %v554_v11, %v550_v1  ;;  %v1596_v13 = vadd.f32 %v499_v6, %v495_v12  ;;  %v659_v26 = vstv %s929_s15  ;;  %p1079_p1 = scmp.ne.s32.totalorder %s801_s22, %s1078_s8  ;;  %s1082_s15 = sshll.u32 %s1173_s12, 4  ;;  %s1083_s15 = int_to_ptr.vmem [resolvable:$false] %s1082_s15 }
 0x171   : > { %v1598_v30 = vadd.f32 %v500_v31, %v496_v32  ;;  %v686_v27 = vmul.f32 %v685_v22, %v1559_v49  ;;  %v711_v41 = vstv %s935_s16  ;;  %v660_v20 = vmul.f32 %v659_v26, %v1559_v49  ;;  %s1084_s16 = scalar_lea.vmem %s1083_s15, 64  ;;  %p1085_p11 = scmp.lt.s32.totalorder %s801_s22, %s1083_s15 }
 0x172   : > { %v707_v29 = vstv %s1608_s25  ;;  %v675_v50 = vstv %s1610_s27  ;;  %v701_v51 = vstv %s1612_s28  ;;  %v727_v52 = vstv %s1614_s29  ;;  %p1080_p8 = pnand %p1079_p1, %p1275_p0  ;;  %p1086_p2 = scmp.lt.s32.totalorder %s1084_s16, %s1078_s8 }
 0x173   : > { %559 = vrot.lane.b32.xlu1 %v448_v37, %s1751_s19  ;;  %557 = vrot.lane.b32.xlu0 %v447_v61, %s1751_s19  ;;  %v1631_v58 = vsel %vm1478_vm6, 1.0, %v1168_v38  ;;  %v712_v14 = vmul.f32 %v711_v41, %v1559_v49  ;;  %v695_v53 = vrot.slane %v686_v27, %v1334_v47  ;;  %v691_v42 = vrot.slane %v686_v27, %v1331_v45 }
 0x174   : > { %v908_v8 = vsel %vm1487_vm9, 1.0, %v1168_v38  ;;  %v665_v21 = vrot.slane %v660_v20, %v1331_v45  ;;  %v669_v40 = vrot.slane %v660_v20, %v1334_v47  ;;  %v909_v26 = vsel %vm1491_vm10, 1.0, %v1168_v38  ;;  %p1081_p13 = pneg %p1080_p8  ;;  %p1087_p12 = por %p1086_p2, %p1085_p11 }
 0x175   : > { %v655_v62 = vstv %s1604_s17  ;;  %v717_v24 = vrot.slane %v712_v14, %v1331_v45  ;;  %v721_v43 = vrot.slane %v712_v14, %v1334_v47  ;;  %v910_v27 = vsel %vm1495_vm11, 1.0, %v1168_v38 }
 0x176   : > { %p1088_p3 = pnand %p1087_p12, %p1081_p13 }
 0x177   : > { %570 = vrot.lane.b32.xlu1 %v556_v17, %s1752_s24  ;;  %568 = vrot.lane.b32.xlu0 %v555_v60, %s1752_s24 }
 0x1dd   : > { %v641_v18 = vpop.permute.xlu1 %640  ;;  %v639_v33 = vpop.permute.xlu0 %638 }
 0x1de   : > { %v642_v57 = vsel %vm329_vm3, %v639_v33, %v641_v18  ;;  %v643_v28 = vsel %vm329_vm3, %v641_v18, %v639_v33 }
 0x1df   : > { %v644_v0 = vmul.f32 %v1421_v15, %v643_v28  ;;  %v683_v39 = vmul.f32 %v681_v19, %v642_v57  ;;  %v657_v48 = vmul.f32 %v655_v62, %v642_v57  ;;  %v709_v35 = vmul.f32 %v707_v29, %v642_v57 }
 0x1e1   : > { %v656_v55 = vmul.f32 %v655_v62, %v644_v0  ;;  %v682_v56 = vmul.f32 %v681_v19, %v644_v0  ;;  %v699_v25 = vadd.f32 %v695_v53, %v683_v39  ;;  %v708_v49 = vmul.f32 %v707_v29, %v644_v0  ;;  %v649_v59 = vpop.permute.xlu1 %648  ;;  %v647_v63 = vpop.permute.xlu0 %646 }
 0x1e2   : > { %v650_v15 = vsel %vm338_vm2, %v647_v63, %v649_v59  ;;  %v651_v5 = vsel %vm338_vm2, %v649_v59, %v647_v63  ;;  %v673_v61 = vadd.f32 %v669_v40, %v657_v48  ;;  %v725_v18 = vadd.f32 %v721_v43, %v709_v35 }
 0x1e3   : > { %v698_v2 = vadd.f32 %v691_v42, %v682_v56  ;;  %v653_v6 = vmul.f32 %v1430_v16, %v651_v5  ;;  %v676_v34 = vmul.f32 %v675_v50, %v650_v15  ;;  %v702_v3 = vmul.f32 %v701_v51, %v650_v15 }
 0x1e4   : > { %v728_v7 = vmul.f32 %v727_v52, %v650_v15  ;;  %v672_v9 = vadd.f32 %v665_v21, %v656_v55  ;;  %v724_v31 = vadd.f32 %v717_v24, %v708_v49 }
 0x1e5   : > { %v703_v36 = vmul.f32 %v701_v51, %v653_v6  ;;  %v704_v10 = vadd.f32 %v702_v3, %v698_v2  ;;  %v560_v1 = vpop.permute.xlu1 %559  ;;  %v558_v11 = vpop.permute.xlu0 %557  ;;  %v677_v12 = vmul.f32 %v675_v50, %v653_v6  ;;  %v729_v16 = vmul.f32 %v727_v52, %v653_v6 }
 0x1e6   : > { %v562_v45 = vsel %vm561_vm7, %v558_v11, %v560_v1  ;;  %v563_v47 = vsel %vm561_vm7, %v560_v1, %v558_v11  ;;  %v678_v60 = vadd.f32 %v676_v34, %v672_v9  ;;  %v730_v33 = vadd.f32 %v728_v7, %v724_v31 }
 0x1e7   : > { %v705_v32 = vadd.f32 %v703_v36, %v699_v25  ;;  %v564_v37 = vmul.f32 %v1631_v58, %v563_v47  ;;  %v565_v17 = vmul.f32 %v908_v8, %v562_v45  ;;  %v679_v22 = vadd.f32 %v677_v12, %v673_v61 }
 0x1e8   : > { %734 = vrot.lane.b32.xlu0 %v678_v60, %s1751_s19  ;;  %v731_v46 = vadd.f32 %v729_v16, %v725_v18 }
 0x1e9   : > { %v566_v41 = vadd.f32 %v564_v37, %v1596_v13  ;;  %v567_v62 = vadd.f32 %v565_v17, %v1598_v30  ;;  %v571_v19 = vpop.permute.xlu1 %570  ;;  %736 = vrot.lane.b32.xlu1 %v679_v22, %s1751_s19  ;;  %v569_v20 = vpop.permute.xlu0 %568  ;;  %s798_s19 = scalar_lea.hbm %s1726_s2, %s945_s6 }
 0x1ea   : > { %v573_v29 = vsel %vm572_vm8, %v569_v20, %v571_v19  ;;  %v574_v44 = vsel %vm572_vm8, %v571_v19, %v569_v20 }
 0x1eb   : > { %v575_v50 = vmul.f32 %v909_v26, %v573_v29  ;;  %v576_v51 = vmul.f32 %v910_v27, %v574_v44 }
 0x1ec   : > { %744 = vrot.lane.b32.xlu0 %v730_v33, %s1752_s24 }
 0x1ed   : > { %v577_v38 = vadd.f32 %v575_v50, %v566_v41  ;;  %v578_v13 = vadd.f32 %v576_v51, %v567_v62  ;;  %746 = vrot.lane.b32.xlu1 %v731_v46, %s1752_s24  ;;  %s786_s24 = scalar_lea.sflag [#allocation6], %s1298_s30 }
 0x1ef   : > { %v732_v30 = vadd.f32 %v704_v10, %v577_v38  ;;  %v733_v52 = vadd.f32 %v705_v32, %v578_v13 }
 0x25a   : > { %v735_v57 = vpop.permute.xlu0 %734 }
 0x25b   : > { %v737_v28 = vpop.permute.xlu1 %736 }
 0x25c   : > { %v738_v14 = vsel %vm561_vm7, %v735_v57, %v737_v28  ;;  %v739_v53 = vsel %vm561_vm7, %v737_v28, %v735_v57 }
 0x25d   : > { %v740_v0 = vmul.f32 %v1631_v58, %v739_v53  ;;  %v741_v39 = vmul.f32 %v908_v8, %v738_v14 }
 0x25e   : > { %v745_v21 = vpop.permute.xlu0 %744 }
 0x25f   : > { %v742_v42 = vadd.f32 %v740_v0, %v732_v30  ;;  %v743_v48 = vadd.f32 %v741_v39, %v733_v52  ;;  %v747_v40 = vpop.permute.xlu1 %746 }
 0x260   : > { %v748_v55 = vsel %vm572_vm8, %v745_v21, %v747_v40  ;;  %v749_v56 = vsel %vm572_vm8, %v747_v40, %v745_v21 }
 0x261   : > { %v750_v25 = vmul.f32 %v909_v26, %v748_v55  ;;  %v751_v49 = vmul.f32 %v910_v27, %v749_v56 }
 0x263   : > { %v752_v59 = vadd.f32 %v750_v25, %v742_v42  ;;  %v753_v63 = vadd.f32 %v751_v49, %v743_v48 }
 0x265   : > { %v937_v15 = vmul.f32 -1.442695, %v752_v59  ;;  %v938_v5 = vmul.f32 -1.442695, %v753_v63 }
 0x267   : > { %1027 = vpow2.f32 %v937_v15 }
 0x268   : > { %1029 = vpow2.f32 %v938_v5 }
 0x274   : > { %v1028_v58 = vpop.eup %1027 }
 0x275   : > { %v1030_v8 = vpop.eup %1029  ;;  %v760_v24 = vadd.f32 1.0, %v1028_v58 }
 0x276   : > { %v761_v43 = vadd.f32 1.0, %v1030_v8 }
 0x277   : > { %1031 = vrcp.f32 %v760_v24 }
 0x278   : > { %1033 = vrcp.f32 %v761_v43 }
 0x284   : > { %v1032_v54 = vpop.eup %1031 }
 0x285   : > { %v1034_v2 = vpop.eup %1033 }
 0x286   : > { %v768_v6 = vcombine.low %v1032_v54, %v1034_v2 }
 0x288   : > { %v775_v34 = vrot.slane %v768_v6, %v1320_v23 }
 0x28a   : > { %v782_v3 = vrot.slane %v775_v34, %v1320_v23 }
 0x28c   : > { %784 = vst.msk [vmem:[%s189_s7] sm:$0x3] %vm1312_vm1, %v782_v3 }
 0x28d   : > { %1091 = shalt.err (!%p1088_p3)
}
 0x28e   : > { %s1092_s17 = scalar_lea.hbm %s798_s19, 32  ;;  %s1096_s25 = scalar_lea.hbm %s1726_s2, 64 }
 0x28f   : > { %p1093_p5 = scmp.ne.s32.totalorder %s798_s19, %s1092_s17  ;;  %p1097_p6 = scmp.lt.s32.totalorder %s798_s19, %s1726_s2 }
 0x290   : > { %p1098_p9 = scmp.lt.s32.totalorder %s1096_s25, %s1092_s17 }
 0x291   : > { %p1094_p7 = pnand %p1093_p5, %p1275_p0 }
 0x292   : > { %p1099_p4 = por %p1098_p9, %p1097_p6 }
 0x293   : > { %p1095_p10 = pneg %p1094_p7 }
 0x295   : > { %p1100_p1 = pnand %p1099_p4, %p1095_p10 }
 0x297   : > { %1103 = shalt.err (!%p1100_p1)
}
 0x298   : > { %952 = dma.vmem_to_hbm [thread:$0]  (%p1275_p0), %s801_s22, 32, %s798_s19, %s786_s24  }
 0x299 PF: > { %s812_s29 = sand.u32 1, %s1142_s9   ;;  %p1753_p8 = scmp.ne.s32.totalorder %s1735_s20, 0 }
 0x29a   : > { %p1754_p13 = scmp.ge.s32.totalorder %s1162_s14, 2  ;;  %s813_s4 = scalar_lea.sflag [#allocation6], %s812_s29 }
 0x29c   : > { %p963_p11 = pnand %p1754_p13, %p1753_p8 }
 0x29e   : > { %p964_p2 = pneg %p963_p11 }
 0x2a0   : > { %1137 = dma.done.wait (%p964_p2), %s813_s4, 32  }
 0x2a1   : > { %1139 = vsyncadd (%p964_p2), %s813_s4, 4294967264  ;;  %s19_s14 = sadd.s32 1, %s1162_s14   ;;  %s1755_s9 = smov %s1146_s10 }
 0x2a2   : > { %p16_p12 = scmp.ge.s32.totalorder %s19_s14, 4   ;;  %s1756_s10 = smov %s1150_s11 }
 0x2a3   : > { %s1757_s11 = smov %s1281_s5  ;;  %s1758_s12 = smov %s1158_s13 }
 0x2a4   : > { %s1759_s13 = smov %s1761_s26  ;;  %18 = sbr.rel (!%p16_p12) target bundleno = 7 (0x7), region = 86 }
 0x2a9   :  { %818 = vsyncpa [#allocation5], 1 }
 0x2aa   :  { %820 = vsyncpa [#allocation5 + $0x1], 1 }
 0x2ab   :  { %821 = vsyncpa [#allocation6], 1 }
 0x2ac   :  { %823 = vsyncpa [#allocation6 + $0x1], 1 }
 0x2ad   :  { %824 = vsyncpa [#allocation7], 1 }
 0x2ae   :  { %826 = vsyncpa [#allocation7 + $0x1], 1 }

</bundles_post_ra>
